<compile_context>
chip_gen: v5e
topology: v5e:2x2
jax: 0.10.0
libtpu: 0.0.40
codegen_flags: <defaults>
</compile_context>

<pallas_src>
import functools

import jax
import jax.numpy as jnp
from jax import lax
from jax.experimental import pallas as pl
from jax.experimental.pallas import tpu as pltpu

EPS = 1e-5
KSIZE = 7
PAD = 3                          # conv padding == halo rows before each tile
HALO = 8                         # 3 before + 5 after -> sublane aligned tiles
LANE = 128
_INV_SQRT2 = 0.7071067811865476
_VMEM_LIMIT = 32 * 1024 * 1024   # explicit, sized for v7x's smaller VMEM


def _round_up(x, m):
    return (x + m - 1) // m * m


def _gelu_exact(x):
    # nn.GELU() default = exact erf GELU (erf goes to the EUP slot).
    return 0.5 * x * (1.0 + lax.erf(x * _INV_SQRT2))


def _depthwise(zh, dww, tl):
    # zh : (tl + HALO, Cp) halo'd slab with zh[j] == z[tile_start + j - PAD]
    # dww: (8, Cp) taps (row 7 is zero padding)
    # y[l, c] = sum_k dww[k, c] * zh[l + k, c]
    # Static sublane-offset slices of an in-vreg value lower to XLU sublane
    # shifts -- no concatenate, no extra VMEM copies.
    y = dww[0:1, :] * zh[0:tl, :]
    for k in range(1, KSIZE):
        y = y + dww[k:k + 1, :] * zh[k:k + tl, :]
    return y


def _masked_stats(x, tl, n_l, seq_len):
    """Per-channel (sum, sumsq) over the valid rows of x, packed as (8, Cp)."""
    if seq_len % tl != 0:                      # static: only emitted if ragged
        j = pl.program_id(0) % n_l
        valid = jnp.minimum(tl, seq_len - j * tl)
        row = lax.broadcasted_iota(jnp.int32, x.shape, 0)
        x = jnp.where(row < valid, x, 0.0)
    s = jnp.sum(x, axis=0, keepdims=True)
    sq = jnp.sum(x * x, axis=0, keepdims=True)
    pad = jnp.zeros((6, x.shape[1]), jnp.float32)
    return jnp.concatenate([s, sq, pad], axis=0)


# ---------------------------- kernels ---------------------------------------

def _dw_stats_kernel(z_ref, dww_ref, st_ref, *, tl, n_l, seq_len):
    zh = z_ref[0].astype(jnp.float32)                       # (tl+HALO, Cp)
    y = _depthwise(zh, dww_ref[...].astype(jnp.float32), tl)
    st_ref[0] = _masked_stats(y, tl, n_l, seq_len)


def _ffn_kernel(z_ref, dww_ref, w1_ref, b1_ref, w2_ref, o_ref, st_ref,
                *, tl, n_l, seq_len):
    zh = z_ref[0].astype(jnp.float32)                       # (tl+HALO, Cp)
    y = _depthwise(zh, dww_ref[...].astype(jnp.float32), tl)  # (tl, Cp)
    # BN1 (training mode) is already folded into w1_ref / b1_ref.
    h = jnp.dot(y, w1_ref[...], preferred_element_type=jnp.float32) + b1_ref[...]
    h = _gelu_exact(h)
    o = jnp.dot(h, w2_ref[...], preferred_element_type=jnp.float32)
    o_ref[0] = o.astype(o_ref.dtype)
    st_ref[0] = _masked_stats(o, tl, n_l, seq_len)


def _bn2_kernel(o_ref, sc_ref, sh_ref, out_ref):
    out_ref[0] = (o_ref[0] * sc_ref[...] + sh_ref[...]).astype(out_ref.dtype)


# ---------------------------- wrapper ----------------------------------------

def lk_ffn(z, dww, dwb, g1, b1, w1, bb1, w2, bb2, g2, b2, *, tile_rows=256):
    """LK_FFN forward.  z is channels-last (B, L, C).

    dwb / bb2 are accepted for API parity but are mathematically cancelled by
    the training-mode BatchNorms that immediately follow them."""
    del dwb, bb2
    B, L, C = z.shape
    H = w1.shape[1]
    f32 = jnp.float32
    Cp = _round_up(C, LANE)
    Hp = _round_up(H, LANE)
    TL = min(tile_rows, _round_up(L, 8))
    nL = -(-L // TL)
    Lp = nL * TL
    G = B * nL

    # ---- channels-last, lane-padded activations with per-tile L halos ------
    zp = jnp.zeros((B, Lp + HALO, Cp), f32)
    zp = zp.at[:, PAD:PAD + L, :C].set(z.astype(f32))
    z_halo = jnp.stack([zp[:, j * TL:j * TL + TL + HALO, :] for j in range(nL)],
                       axis=1).reshape(G, TL + HALO, Cp)

    # ---- lane-padded parameters (padded gammas are zero -> padded chans = 0)
    dww_p = jnp.zeros((8, Cp), f32).at[:KSIZE, :C].set(dww.astype(f32))
    g1_p = jnp.zeros((1, Cp), f32).at[:, :C].set(g1.reshape(1, C).astype(f32))
    b1_p = jnp.zeros((1, Cp), f32).at[:, :C].set(b1.reshape(1, C).astype(f32))
    w1_p = jnp.zeros((Cp, Hp), f32).at[:C, :H].set(w1.astype(f32))
    bb1_p = jnp.zeros((1, Hp), f32).at[:, :H].set(bb1.reshape(1, H).astype(f32))
    w2_p = jnp.zeros((Hp, Cp), f32).at[:H, :C].set(w2.astype(f32))
    g2_p = jnp.zeros((1, Cp), f32).at[:, :C].set(g2.reshape(1, C).astype(f32))
    b2_p = jnp.zeros((1, Cp), f32).at[:, :C].set(b2.reshape(1, C).astype(f32))

    cparams = pltpu.CompilerParams(dimension_semantics=("parallel",),
                                   vmem_limit_bytes=_VMEM_LIMIT)
    tile_spec = lambda rows: pl.BlockSpec((1, rows, Cp), lambda i: (i, 0, 0))
    const2d = lambda shape: pl.BlockSpec(shape, lambda i: (0, 0))

    # ---- pass 1: depthwise conv -> global BN1 statistics (partials) --------
    stats1 = pl.pallas_call(
        functools.partial(_dw_stats_kernel, tl=TL, n_l=nL, seq_len=L),
        out_shape=jax.ShapeDtypeStruct((G, 8, Cp), f32),
        grid=(G,),
        in_specs=[tile_spec(TL + HALO), const2d((8, Cp))],
        out_specs=tile_spec(8),
        compiler_params=cparams,
    )(z_halo, dww_p)

    n = jnp.float32(B * L)

    def bn_affine(stats, gamma, beta):
        ssum = jnp.sum(stats[:, 0, :], axis=0, keepdims=True)
        ssq = jnp.sum(stats[:, 1, :], axis=0, keepdims=True)
        mean = ssum / n
        var = jnp.maximum(ssq / n - mean * mean, 0.0)   # one-pass biased var
        scale = gamma * lax.rsqrt(var + EPS)
        return scale, beta - mean * scale

    # Fold BN1's per-channel affine into fc1.
    scale1, shift1 = bn_affine(stats1, g1_p, b1_p)
    w1_eff = w1_p * scale1.reshape(Cp, 1)
    bb1_eff = bb1_p + shift1 @ w1_p

    # ---- pass 2: conv -> fc1 -> GELU -> fc2 (+ BN2 statistics) -------------
    cost = pl.CostEstimate(
        flops=2 * KSIZE * G * TL * Cp + 4 * G * TL * Cp * Hp,
        transcendentals=G * TL * Hp,
        bytes_accessed=4 * (G * (TL + HALO) * Cp + 8 * Cp + Cp * Hp + Hp
                            + Hp * Cp + G * TL * Cp + G * 8 * Cp),
    )
    o_tiles, stats2 = pl.pallas_call(
        functools.partial(_ffn_kernel, tl=TL, n_l=nL, seq_len=L),
        out_shape=(jax.ShapeDtypeStruct((G, TL, Cp), f32),
                   jax.ShapeDtypeStruct((G, 8, Cp), f32)),
        grid=(G,),
        in_specs=[tile_spec(TL + HALO), const2d((8, Cp)), const2d((Cp, Hp)),
                  const2d((1, Hp)), const2d((Hp, Cp))],
        out_specs=(tile_spec(TL), tile_spec(8)),
        compiler_params=cparams,
        cost_estimate=cost,
    )(z_halo, dww_p, w1_eff, bb1_eff, w2_p)

    # ---- pass 3: BN2 as a per-channel scale/shift epilogue -----------------
    scale2, shift2 = bn_affine(stats2, g2_p, b2_p)
    out_tiles = pl.pallas_call(
        _bn2_kernel,
        out_shape=jax.ShapeDtypeStruct((G, TL, Cp), z.dtype),
        grid=(G,),
        in_specs=[tile_spec(TL), const2d((1, Cp)), const2d((1, Cp))],
        out_specs=tile_spec(TL),
        compiler_params=cparams,
    )(o_tiles, scale2, shift2)

    return out_tiles.reshape(B, Lp, Cp)[:, :L, :C]


# ---------------------------- pure-JAX reference -----------------------------

def lk_ffn_reference(z, dww, dwb, g1, b1, w1, bb1, w2, bb2, g2, b2):
    """Full-semantics reference (channels-last), training-mode BatchNorm."""
    B, L, C = z.shape
    zp = jnp.pad(z, ((0, 0), (PAD, PAD), (0, 0)))
    y = sum(zp[:, k:k + L, :] * dww[k].reshape(1, 1, C) for k in range(KSIZE))
    y = y + dwb.reshape(1, 1, C)

    def bnorm(x, g, b):
        m = jnp.mean(x, axis=(0, 1), keepdims=True)
        v = jnp.mean((x - m) ** 2, axis=(0, 1), keepdims=True)
        return (x - m) / jnp.sqrt(v + EPS) * g.reshape(1, 1, -1) + b.reshape(1, 1, -1)

    y = bnorm(y, g1, b1)
    h = jnp.einsum('blc,ch->blh', y, w1) + bb1.reshape(1, 1, -1)
    h = 0.5 * h * (1.0 + lax.erf(h / jnp.sqrt(2.0)))
    o = jnp.einsum('blh,hc->blc', h, w2) + bb2.reshape(1, 1, -1)
    return bnorm(o, g2, b2)


if __name__ == "__main__":
    B, C, L, EXP = 2, 4, 16, 4
    H = C * EXP

    key = jax.random.PRNGKey(0)
    ks = jax.random.split(key, 11)
    z   = jax.random.normal(ks[0], (B, L, C), jnp.float32)          # torch (B,C,L) transposed
    dww = 0.3 * jax.random.normal(ks[1], (KSIZE, C), jnp.float32)   # torch (C,1,7) -> (7,C)
    dwb = 0.1 * jax.random.normal(ks[2], (1, C), jnp.float32)
    g1  = 1.0 + 0.1 * jax.random.normal(ks[3], (1, C), jnp.float32)
    b1  = 0.1 * jax.random.normal(ks[4], (1, C), jnp.float32)
    w1  = jax.random.normal(ks[5], (C, H), jnp.float32) / jnp.sqrt(C)   # torch (H,C,1) -> (C,H)
    bb1 = 0.1 * jax.random.normal(ks[6], (1, H), jnp.float32)
    w2  = jax.random.normal(ks[7], (H, C), jnp.float32) / jnp.sqrt(H)   # torch (C,H,1) -> (H,C)
    bb2 = 0.1 * jax.random.normal(ks[8], (1, C), jnp.float32)
    g2  = 1.0 + 0.1 * jax.random.normal(ks[9], (1, C), jnp.float32)
    b2  = 0.1 * jax.random.normal(ks[10], (1, C), jnp.float32)

    out = lk_ffn(z, dww, dwb, g1, b1, w1, bb1, w2, bb2, g2, b2)
    out = jax.block_until_ready(out)

    ref = lk_ffn_reference(z, dww, dwb, g1, b1, w1, bb1, w2, bb2, g2, b2)
    assert out.shape == (B, L, C)
    assert jnp.allclose(out, ref, atol=1e-4, rtol=1e-4), "mismatch vs reference"

    print("KERNEL_OK")
</pallas_src>

<mosaic_0001>
module attributes {stable_mosaic.version = 11 : i64} {
  func.func @_dw_stats_kernel(%arg0: i32, %arg1: memref<1x24x128xf32, #tpu.memory_space<vmem>>, %arg2: memref<8x128xf32, #tpu.memory_space<vmem>>, %arg3: memref<1x8x128xf32, #tpu.memory_space<vmem>>) attributes {dimension_semantics = [#tpu.dimension_semantics<parallel>], iteration_bounds = array<i64: 2>, scalar_prefetch = 0 : i64, scratch_operands = 0 : i64, tpu.core_type = #tpu.core_type<tc>, window_params = [{transform_indices = @transform_0, window_bounds = array<i64: 1, 24, 128>}, {pipeline_mode = #tpu.pipeline_mode<synchronous>, transform_indices = @transform_1, window_bounds = array<i64: 8, 128>}, {transform_indices = @transform_2, window_bounds = array<i64: 1, 8, 128>}]} {
    %c0 = arith.constant 0 : index
    %c0_0 = arith.constant 0 : index
    %c0_1 = arith.constant 0 : index
    %0 = vector.load %arg1[%c0, %c0_0, %c0_1] : memref<1x24x128xf32, #tpu.memory_space<vmem>>, vector<1x24x128xf32>
    %1 = vector.shape_cast %0 : vector<1x24x128xf32> to vector<24x128xf32>
    %c0_2 = arith.constant 0 : index
    %c0_3 = arith.constant 0 : index
    %2 = vector.load %arg2[%c0_2, %c0_3] : memref<8x128xf32, #tpu.memory_space<vmem>>, vector<8x128xf32>
    %3 = vector.extract_strided_slice %2 {offsets = [0, 0], sizes = [1, 128], strides = [1, 1]} : vector<8x128xf32> to vector<1x128xf32>
    %4 = vector.extract_strided_slice %1 {offsets = [0, 0], sizes = [16, 128], strides = [1, 1]} : vector<24x128xf32> to vector<16x128xf32>
    %5 = vector.broadcast %3 : vector<1x128xf32> to vector<16x128xf32>
    %6 = arith.mulf %5, %4 : vector<16x128xf32>
    %7 = vector.extract_strided_slice %2 {offsets = [1, 0], sizes = [1, 128], strides = [1, 1]} : vector<8x128xf32> to vector<1x128xf32>
    %8 = vector.extract_strided_slice %1 {offsets = [1, 0], sizes = [16, 128], strides = [1, 1]} : vector<24x128xf32> to vector<16x128xf32>
    %9 = vector.broadcast %7 : vector<1x128xf32> to vector<16x128xf32>
    %10 = arith.mulf %9, %8 : vector<16x128xf32>
    %11 = arith.addf %6, %10 : vector<16x128xf32>
    %12 = vector.extract_strided_slice %2 {offsets = [2, 0], sizes = [1, 128], strides = [1, 1]} : vector<8x128xf32> to vector<1x128xf32>
    %13 = vector.extract_strided_slice %1 {offsets = [2, 0], sizes = [16, 128], strides = [1, 1]} : vector<24x128xf32> to vector<16x128xf32>
    %14 = vector.broadcast %12 : vector<1x128xf32> to vector<16x128xf32>
    %15 = arith.mulf %14, %13 : vector<16x128xf32>
    %16 = arith.addf %11, %15 : vector<16x128xf32>
    %17 = vector.extract_strided_slice %2 {offsets = [3, 0], sizes = [1, 128], strides = [1, 1]} : vector<8x128xf32> to vector<1x128xf32>
    %18 = vector.extract_strided_slice %1 {offsets = [3, 0], sizes = [16, 128], strides = [1, 1]} : vector<24x128xf32> to vector<16x128xf32>
    %19 = vector.broadcast %17 : vector<1x128xf32> to vector<16x128xf32>
    %20 = arith.mulf %19, %18 : vector<16x128xf32>
    %21 = arith.addf %16, %20 : vector<16x128xf32>
    %22 = vector.extract_strided_slice %2 {offsets = [4, 0], sizes = [1, 128], strides = [1, 1]} : vector<8x128xf32> to vector<1x128xf32>
    %23 = vector.extract_strided_slice %1 {offsets = [4, 0], sizes = [16, 128], strides = [1, 1]} : vector<24x128xf32> to vector<16x128xf32>
    %24 = vector.broadcast %22 : vector<1x128xf32> to vector<16x128xf32>
    %25 = arith.mulf %24, %23 : vector<16x128xf32>
    %26 = arith.addf %21, %25 : vector<16x128xf32>
    %27 = vector.extract_strided_slice %2 {offsets = [5, 0], sizes = [1, 128], strides = [1, 1]} : vector<8x128xf32> to vector<1x128xf32>
    %28 = vector.extract_strided_slice %1 {offsets = [5, 0], sizes = [16, 128], strides = [1, 1]} : vector<24x128xf32> to vector<16x128xf32>
    %29 = vector.broadcast %27 : vector<1x128xf32> to vector<16x128xf32>
    %30 = arith.mulf %29, %28 : vector<16x128xf32>
    %31 = arith.addf %26, %30 : vector<16x128xf32>
    %32 = vector.extract_strided_slice %2 {offsets = [6, 0], sizes = [1, 128], strides = [1, 1]} : vector<8x128xf32> to vector<1x128xf32>
    %33 = vector.extract_strided_slice %1 {offsets = [6, 0], sizes = [16, 128], strides = [1, 1]} : vector<24x128xf32> to vector<16x128xf32>
    %34 = vector.broadcast %32 : vector<1x128xf32> to vector<16x128xf32>
    %35 = arith.mulf %34, %33 : vector<16x128xf32>
    %36 = arith.addf %31, %35 : vector<16x128xf32>
    %cst = arith.constant dense<0.000000e+00> : vector<128xf32>
    %37 = vector.multi_reduction <add>, %36, %cst [0] : vector<16x128xf32> to vector<128xf32>
    %38 = vector.shape_cast %37 : vector<128xf32> to vector<1x128xf32>
    %39 = arith.mulf %36, %36 : vector<16x128xf32>
    %cst_4 = arith.constant dense<0.000000e+00> : vector<128xf32>
    %40 = vector.multi_reduction <add>, %39, %cst_4 [0] : vector<16x128xf32> to vector<128xf32>
    %41 = vector.shape_cast %40 : vector<128xf32> to vector<1x128xf32>
    %cst_5 = arith.constant 0.000000e+00 : f32
    %42 = vector.broadcast %cst_5 : f32 to vector<6x128xf32>
    %43 = tpu.concatenate %38, %41, %42 in 0 : vector<1x128xf32>, vector<1x128xf32>, vector<6x128xf32> -> vector<8x128xf32>
    %c0_6 = arith.constant 0 : index
    %c0_7 = arith.constant 0 : index
    %c0_8 = arith.constant 0 : index
    %44 = vector.load %arg3[%c0_6, %c0_7, %c0_8] : memref<1x8x128xf32, #tpu.memory_space<vmem>>, vector<1x8x128xf32>
    %45 = vector.shape_cast %44 : vector<1x8x128xf32> to vector<8x128xf32>
    %46 = vector.shape_cast %43 : vector<8x128xf32> to vector<1x8x128xf32>
    tpu.vector_store %arg3[%c0_6, %c0_7, %c0_8], %46 {strides = array<i32>} : memref<1x8x128xf32, #tpu.memory_space<vmem>>, vector<1x8x128xf32>,
    return
  }
  func.func @transform_0(%arg0: i32) -> (i32, i32, i32) {
    %c0_i32 = arith.constant 0 : i32
    %c0_i32_0 = arith.constant 0 : i32
    %c0_i32_1 = arith.constant 0 : i32
    return %arg0, %c0_i32, %c0_i32_0 : i32, i32, i32
  }
  func.func @transform_1(%arg0: i32) -> (i32, i32) {
    %c0_i32 = arith.constant 0 : i32
    %c0_i32_0 = arith.constant 0 : i32
    %c0_i32_1 = arith.constant 0 : i32
    return %c0_i32, %c0_i32_0 : i32, i32
  }
  func.func @transform_2(%arg0: i32) -> (i32, i32, i32) {
    %c0_i32 = arith.constant 0 : i32
    %c0_i32_0 = arith.constant 0 : i32
    %c0_i32_1 = arith.constant 0 : i32
    return %arg0, %c0_i32, %c0_i32_0 : i32, i32, i32
  }
}

</mosaic_0001>

<bundles_post_ra>
// kernel: tpu_custom_call.1
= control target key start
LH: loop header
LB: loop body
LE: loop exit
PB: predicated region body
PF: predicated region fallthrough
CT: control target
= control target key end

     0   :  { %7 = vsyncpa [#allocation3], 0  ;;  %s801_s0 = inlined_call_operand.hbm [shape: f32[2,24,128], index: 0, kind: input, shape index: {}]   ;;  %s802_s1 = inlined_call_operand.hbm [shape: f32[8,128], index: 1, kind: input, shape index: {}]   ;;  %s803_s2 = inlined_call_operand.hbm [shape: f32[2,8,128], index: 2, kind: output, shape index: {}]  }
   0x1   :  { %9 = vsyncpa [#allocation3 + $0x1], 0 }
   0x2   :  { %10 = vsyncpa [#allocation6], 0 }
   0x3   :  { %11 = vsyncpa [#allocation4], 0 }
   0x4   :  { %13 = vsyncpa [#allocation4 + $0x1], 0  ;;  %s628_s9 = smov 0   ;;  %s630_s10 = smov 0  }
   0x5   :  { %s632_s11 = smov 0   ;;  %s634_s12 = smov 0  }
   0x6 LB: > { %s649_s13 = sadd.s32 4294967295, %s608_s12   ;;  %s404_s14 = sadd.s32 4294967294, %s608_s12   ;;  %s608_s12 = sphi %s634_s12, %s814_s12   ;;  %s604_s11 = sphi %s632_s11, %s813_s11   ;;  %s600_s10 = sphi %s630_s10, %s812_s10   ;;  %s596_s9 = sphi %s628_s9, %s811_s9  }
   0x7   : > { %s653_s15 = sadd.s32 1, %s608_s12   ;;  %s26_s16 = sadd.s32 1, %s604_s11 }
   0x8   : > { %s23_s17 = ssub.s32 %s608_s12, %s653_s15  ;;  %p33_p0 = scmp.ne.s32.totalorder %s604_s11, %s600_s10 }
   0x9   : > { %p24_p1 = scmp.eq.s32.totalorder %s23_s17, 0  ;;  %p34_p2 = scmp.eq.s32.totalorder %s608_s12, 0 }
   0xa   : > { %p39_p3 = scmp.ne.s32.totalorder %s600_s10, %s596_s9  ;;  %p40_p4 = scmp.eq.s32.totalorder %s649_s13, 0 }
   0xb   : > { %s665_s18 = scalar_select %p24_p1, %s604_s11, %s26_s16  }
   0xc   : > { %p667_p5 = por %p34_p2, %p33_p0  ;;  %p673_p6 = por %p40_p4, %p39_p3 }
   0xd   : > { %p84_p7 = scmp.eq.s32.totalorder %s649_s13, 1  ;;  %p90_p8 = scmp.eq.s32.totalorder %s404_s14, 1 }
   0xe   : > { %p405_p9 = scmp.ge.s32.totalorder %s608_s12, 1  ;;  %p97_p10 = scmp.lt.s32.totalorder %s608_s12, 3 }
   0xf   : > { %p680_p11 = por %p84_p7, %p33_p0  ;;  %p684_p12 = por %p90_p8, %p39_p3 }
  0x10   : > { %p688_p13 = pnand %p405_p9, %p97_p10  ;;  %s109_s26 = sshll.u32 %s802_s1, 4  ;;  %s110_s26 = int_to_ptr.hbm [resolvable:$true] %s109_s26 }
  0x11   : > { %s610_s27 = smov [#allocation5]   ;;  %p440_p3 = scmp.lt.s32.totalorder %s608_s12, 2 }
  0x12   : > { %p427_p1 = pneg %p688_p13  ;;  %s111_s28 = sshll.u32 %s610_s27, 4  ;;  %s112_s28 = int_to_ptr.vmem [resolvable:$true] %s111_s28 }
  0x13   : > { %s122_s29 = sand.u32 1, %s604_s11   ;;  %p704_p7 = pnand %p440_p3, %p667_p5 }
  0x14   : > { %p428_p2 = pnand %p427_p1, %p40_p4  ;;  %s416_s3 = smul.u32 24, %s122_s29 }
  0x15   : > { %s417_s4 = smul.u32 24, %s608_s12  ;;  %s123_s17 = scalar_lea.sflag [#allocation3], %s122_s29 }
  0x16   : > { %430 = dma.hbm_to_vmem [thread:$0]  (!%p428_p2), %s110_s26, 128, %s112_s28, [#allocation6]  }
  0x17   : > { %s131_s7 = scalar_lea.hbm %s801_s0, %s417_s4  ;;  %s126_s8 = scalar_lea.vmem [#allocation2], %s416_s3 }
  0x18   : > { %s134_s14 = sshll.u32 %s126_s8, 4  ;;  %s132_s16 = sshll.u32 %s131_s7, 4  ;;  %s135_s14 = int_to_ptr.vmem [resolvable:$true] %s134_s14  ;;  %s133_s16 = int_to_ptr.hbm [resolvable:$true] %s132_s16 }
  0x19   : > { %s508_s24 = sshra.s32 %s133_s16, 4  ;;  %p512_p8 = pneg %p704_p7  ;;  %s509_s24 = int_to_ptr.hbm [resolvable:$true] %s508_s24 }
  0x1a   : > { %s510_s19 = scalar_lea.hbm %s509_s24, 24  ;;  %s515_s27 = scalar_lea.hbm %s801_s0, 48 }
  0x1b   : > { %p511_p5 = scmp.ne.s32.totalorder %s509_s24, %s510_s19  ;;  %p516_p1 = scmp.lt.s32.totalorder %s509_s24, %s801_s0 }
  0x1c   : > { %p517_p2 = scmp.lt.s32.totalorder %s515_s27, %s510_s19 }
  0x1d   : > { %p513_p9 = pnand %p512_p8, %p511_p5 }
  0x1e   : > { %p518_p3 = por %p517_p2, %p516_p1 }
  0x1f   : > { %p514_p10 = pneg %p513_p9 }
  0x21   : > { %p519_p0 = pnand %p518_p3, %p514_p10 }
  0x23   : > { %522 = shalt.err (!%p519_p0)
}
  0x24   : > { %s611_s29 = smov 128   ;;  %s612_s3 = smov 8  }
  0x25   : > { %434 = dma.hbm_to_vmem [thread:$0]  (!%p704_p7), %s133_s16, 384, %s135_s14, %s123_s17, %s611_s29, %s611_s29, %s612_s3  }
  0x26   : > { %146 = sbr.rel (%p688_p13) target bundleno = 90 (0x5a), region = 28  ;;  %s725_s5 = sand.u32 (!%p688_p13), 1, %s600_s10  }
  0x27   : > { %s418_s6 = smul.u32 (!%p688_p13), 24, %s725_s5  ;;  %s149_s7 = scalar_lea.sflag (!%p688_p13), [#allocation3], %s725_s5 }
  0x29   : > { %s152_s8 = scalar_lea.vmem (!%p688_p13), [#allocation2], %s418_s6 }
  0x2b   : > { %583 = dma.done.wait (%p673_p6), %s149_s7, 384  }
  0x2c   : > { %585 = vsyncadd (%p673_p6), %s149_s7, 4294966912 }
  0x2d   : > { %587 = dma.done.wait (%p40_p4), [#allocation6], 128  }
  0x2e   : > { %589 = vsyncadd (%p40_p4), [#allocation6], 4294967168  ;;  %v179_v0 = vld [vmem:[%s152_s8] sm:$0xff]  ;;  %v737_v1 = vld [vmem:[%s152_s8 + $0x8] sm:$0xff]  ;;  %vm193_vm0 = vcmask 1046528   ;;  %vm210_vm1 = vcmask 1045504  }
  0x2f   : > { %v182_v2 = vld [vmem:[#allocation5] sm:$0xff]  ;;  %vm227_vm2 = vcmask 1044480   ;;  %vm244_vm3 = vcmask 1043456   ;;  %vm261_vm4 = vcmask 1042432   ;;  %vm278_vm5 = vcmask 1041408   ;;  %s411_s20 = sshll.u32 %s725_s5, 3 }
  0x30   : > { %v739_v3 = vld [vmem:[%s152_s8 + $0x10] sm:$0xff]  ;;  %v183_v4 = vperm.slane %v182_v2, 0  ;;  %v186_v5 = vperm.slane %v182_v2, 1  ;;  %v203_v6 = vperm.slane %v182_v2, 2  ;;  %v220_v7 = vperm.slane %v182_v2, 3  ;;  %s413_s23 = sshll.u32 %s649_s13, 3 }
  0x31   : > { %v237_v8 = vperm.slane %v182_v2, 4  ;;  %v254_v9 = vperm.slane %v182_v2, 5  ;;  %v271_v10 = vperm.slane %v182_v2, 6  ;;  %s319_s16 = scalar_lea.hbm %s803_s2, %s413_s23  ;;  %vm304_vm6 = vcmask 1040384   ;;  %s178_s17 = scalar_lea.vmem [#allocation7], %s411_s20 }
  0x32   : > { %v184_v11 = vmul.f32 %v183_v4, %v179_v0  ;;  %v185_v12 = vmul.f32 %v183_v4, %v737_v1  ;;  %v187_v13 = vmul.f32 %v186_v5, %v179_v0  ;;  %v188_v14 = vmul.f32 %v186_v5, %v737_v1  ;;  %s321_s24 = sshll.u32 %s178_s17, 4  ;;  %s323_s19 = sshll.u32 %s319_s16, 4  ;;  %s322_s24 = int_to_ptr.vmem [resolvable:$true] %s321_s24  ;;  %s324_s19 = int_to_ptr.hbm [resolvable:$true] %s323_s19 }
  0x33   : > { %v189_v15 = vmul.f32 %v186_v5, %v739_v3  ;;  %v204_v16 = vmul.f32 %v203_v6, %v179_v0  ;;  %v205_v17 = vmul.f32 %v203_v6, %v737_v1  ;;  %v206_v18 = vmul.f32 %v203_v6, %v739_v3  ;;  %s309_s13 = scalar_lea.sflag [#allocation4], %s725_s5  ;;  %s552_s25 = sshra.s32 %s324_s19, 4  ;;  %s553_s25 = int_to_ptr.hbm [resolvable:$true] %s552_s25 }
  0x34   : > { %v194_v19 = vrot.slane %v187_v13, 1  ;;  %v195_v20 = vrot.slane %v188_v14, 1  ;;  %v221_v21 = vmul.f32 %v220_v7, %v179_v0  ;;  %v222_v22 = vmul.f32 %v220_v7, %v737_v1  ;;  %s554_s26 = scalar_lea.hbm %s553_s25, 8  ;;  %s558_s4 = scalar_lea.hbm %s803_s2, 16 }
  0x35   : > { %v197_v23 = vrot.slane %v189_v15, 1  ;;  %v211_v24 = vrot.slane %v204_v16, 2  ;;  %v212_v25 = vrot.slane %v205_v17, 2  ;;  %v214_v26 = vrot.slane %v206_v18, 2  ;;  %p555_p4 = scmp.ne.s32.totalorder %s553_s25, %s554_s26  ;;  %p559_p0 = scmp.lt.s32.totalorder %s553_s25, %s803_s2 }
  0x36   : > { %v196_v27 = vsel %vm193_vm0, %v194_v19, %v195_v20  ;;  %v223_v28 = vmul.f32 %v220_v7, %v739_v3  ;;  %v228_v29 = vrot.slane %v221_v21, 3  ;;  %v229_v30 = vrot.slane %v222_v22, 3  ;;  %p560_p7 = scmp.lt.s32.totalorder %s558_s4, %s554_s26 }
  0x37   : > { %v198_v31 = vsel %vm193_vm0, %v195_v20, %v197_v23  ;;  %v201_v32 = vadd.f32 %v196_v27, %v184_v11  ;;  %v213_v33 = vsel %vm210_vm1, %v211_v24, %v212_v25  ;;  %v215_v34 = vsel %vm210_vm1, %v212_v25, %v214_v26  ;;  %p556_p6 = pnand %p555_p4, %p680_p11 }
  0x38   : > { %v202_v35 = vadd.f32 %v198_v31, %v185_v12  ;;  %v230_v36 = vsel %vm227_vm2, %v228_v29, %v229_v30  ;;  %v231_v37 = vrot.slane %v223_v28, 3  ;;  %v238_v38 = vmul.f32 %v237_v8, %v179_v0  ;;  %p561_p5 = por %p560_p7, %p559_p0 }
  0x39   : > { %v218_v39 = vadd.f32 %v213_v33, %v201_v32  ;;  %v239_v40 = vmul.f32 %v237_v8, %v737_v1  ;;  %v240_v41 = vmul.f32 %v237_v8, %v739_v3  ;;  %v255_v42 = vmul.f32 %v254_v9, %v179_v0  ;;  %p557_p13 = pneg %p556_p6 }
  0x3a   : > { %v219_v43 = vadd.f32 %v215_v34, %v202_v35  ;;  %v232_v44 = vsel %vm227_vm2, %v229_v30, %v231_v37  ;;  %v245_v45 = vrot.slane %v238_v38, 4  ;;  %v256_v46 = vmul.f32 %v254_v9, %v737_v1 }
  0x3b   : > { %v235_v47 = vadd.f32 %v230_v36, %v218_v39  ;;  %v246_v48 = vrot.slane %v239_v40, 4  ;;  %v248_v49 = vrot.slane %v240_v41, 4  ;;  %v257_v50 = vmul.f32 %v254_v9, %v739_v3  ;;  %p562_p8 = pnand %p561_p5, %p557_p13 }
  0x3c   : > { %v236_v51 = vadd.f32 %v232_v44, %v219_v43  ;;  %v262_v52 = vrot.slane %v255_v42, 5  ;;  %v263_v53 = vrot.slane %v256_v46, 5  ;;  %v272_v54 = vmul.f32 %v271_v10, %v179_v0 }
  0x3d   : > { %v247_v55 = vsel %vm244_vm3, %v245_v45, %v246_v48  ;;  %v249_v56 = vsel %vm244_vm3, %v246_v48, %v248_v49  ;;  %v265_v57 = vrot.slane %v257_v50, 5  ;;  %v273_v58 = vmul.f32 %v271_v10, %v737_v1 }
  0x3e   : > { %v252_v59 = vadd.f32 %v247_v55, %v235_v47  ;;  %v253_v60 = vadd.f32 %v249_v56, %v236_v51  ;;  %v264_v61 = vsel %vm261_vm4, %v262_v52, %v263_v53  ;;  %v274_v62 = vmul.f32 %v271_v10, %v739_v3 }
  0x3f   : > { %v266_v63 = vsel %vm261_vm4, %v263_v53, %v265_v57  ;;  %v279_v2 = vrot.slane %v272_v54, 6  ;;  %v280_v4 = vrot.slane %v273_v58, 6 }
  0x40   : > { %v269_v5 = vadd.f32 %v264_v61, %v252_v59  ;;  %v270_v0 = vadd.f32 %v266_v63, %v253_v60  ;;  %v282_v6 = vrot.slane %v274_v62, 6 }
  0x41   : > { %v281_v7 = vsel %vm278_vm5, %v279_v2, %v280_v4 }
  0x42   : > { %v283_v8 = vsel %vm278_vm5, %v280_v4, %v282_v6  ;;  %v286_v1 = vadd.f32 %v281_v7, %v269_v5 }
  0x43   : > { %v287_v9 = vadd.f32 %v283_v8, %v270_v0 }
  0x44   : > { %v295_v11 = vmul.f32 %v286_v1, %v286_v1 }
  0x45   : > { %v288_v12 = vadd.f32 %v287_v9, %v286_v1  ;;  %v296_v13 = vmul.f32 %v287_v9, %v287_v9 }
  0x47   : > { %v289_v14 = vrot.slane %v288_v12, 4  ;;  %v297_v3 = vadd.f32 %v296_v13, %v295_v11 }
  0x49   : > { %v290_v10 = vadd.f32 %v289_v14, %v288_v12  ;;  %v298_v15 = vrot.slane %v297_v3, 4 }
  0x4b   : > { %v291_v16 = vrot.slane %v290_v10, 2  ;;  %v299_v17 = vadd.f32 %v298_v15, %v297_v3 }
  0x4d   : > { %v292_v18 = vadd.f32 %v291_v16, %v290_v10  ;;  %v300_v19 = vrot.slane %v299_v17, 2 }
  0x4f   : > { %v293_v20 = vrot.slane %v292_v18, 1  ;;  %v301_v21 = vadd.f32 %v300_v19, %v299_v17 }
  0x51   : > { %v294_v22 = vadd.f32 %v293_v20, %v292_v18  ;;  %v302_v23 = vrot.slane %v301_v21, 1 }
  0x53   : > { %v303_v24 = vadd.f32 %v302_v23, %v301_v21 }
  0x55   : > { %v305_v25 = vsel %vm304_vm6, %v294_v22, %v303_v24 }
  0x56   : > { %v306_v26 = vsel %vm278_vm5, %v305_v25, 0.0 }
  0x57   : > { %307 = vst [vmem:[%s178_s17] sm:$0xff] %v306_v26 }
  0x58   : > { %565 = shalt.err (!%p562_p8)
}
  0x59   : > { %425 = dma.vmem_to_hbm [thread:$0]  (%p680_p11), %s322_s24, 128, %s324_s19, %s309_s13  }
  0x5a PF: > { %s335_s5 = sand.u32 1, %s596_s9   ;;  %p810_p9 = scmp.ge.s32.totalorder %s608_s12, 2 }
  0x5b   : > { %s336_s6 = scalar_lea.sflag [#allocation4], %s335_s5 }
  0x5c   : > { %p436_p10 = pnand %p810_p9, %p684_p12 }
  0x5e   : > { %p437_p1 = pneg %p436_p10 }
  0x60   : > { %591 = dma.done.wait (%p437_p1), %s336_s6, 128  }
  0x61   : > { %593 = vsyncadd (%p437_p1), %s336_s6, 4294967168  ;;  %p16_p2 = scmp.ge.s32.totalorder %s653_s15, 4   ;;  %s811_s9 = smov %s600_s10 }
  0x62   : > { %s812_s10 = smov %s604_s11  ;;  %s813_s11 = smov %s665_s18 }
  0x63   : > { %s814_s12 = smov %s653_s15  ;;  %18 = sbr.rel (!%p16_p2) target bundleno = 6 (0x6), region = 77 }
  0x68   :  { %342 = vsyncpa [#allocation3], 1 }
  0x69   :  { %344 = vsyncpa [#allocation3 + $0x1], 1 }
  0x6a   :  { %345 = vsyncpa [#allocation6], 1 }
  0x6b   :  { %346 = vsyncpa [#allocation4], 1 }
  0x6c   :  { %348 = vsyncpa [#allocation4 + $0x1], 1 }

</bundles_post_ra>
